<compile_context>
chip_gen: v7x
topology: tpu7x:2x2x1
jax: 0.10.0
libtpu: 0.0.40
codegen_flags: <defaults>
</compile_context>

<pallas_src>
import jax
import jax.numpy as jnp
from jax.experimental import pallas as pl
from jax.experimental.pallas import tpu as pltpu

_LANE = 128
_SUBLANE = 8
_DEFAULT_TILE_V = 2048   # (128, 2048) bf16 weight tile = 512 KiB; x2 buffers = 1 MiB


def _round_up(x, m):
    return (x + m - 1) // m * m


def _choose_tb(batch, v_pad):
    """Batch-tile rows: multiple of 8 sublanes (up to 128), capped so the
    resident (tb, v_pad) f32 output slab stays well inside VMEM (v7x: 64 MiB)."""
    tb = _round_up(min(max(batch, _SUBLANE), 128), _SUBLANE)
    cap = max(_SUBLANE,
              ((8 * 1024 * 1024) // (v_pad * 4 * 2)) // _SUBLANE * _SUBLANE)
    return int(min(tb, cap))


def prepare_params(emb_weight, lin_weight, lin_bias, tile_v=None):
    """One-time layout prep — do NOT call per step (hoisted transpose/pad/cast).

    Returns (emb_p, w_t_p, bias_p, meta):
      emb_p : (V, D_pad)   f32   embedding table, D zero-padded to 128 lanes
      w_t_p : (D_pad,V_pad) bf16 linear weight, transposed once to (D, V) layout
      bias_p: (1, V_pad)   f32   linear bias
    """
    v, d = emb_weight.shape
    d_pad = _round_up(d, _LANE)
    if tile_v is None:
        tile_v = min(_DEFAULT_TILE_V, _round_up(v, _LANE))
    v_pad = _round_up(v, tile_v)

    emb_p = jnp.zeros((v, d_pad), jnp.float32).at[:, :d].set(
        emb_weight.astype(jnp.float32))
    w_t_p = jnp.zeros((d_pad, v_pad), jnp.bfloat16).at[:d, :v].set(
        lin_weight.T.astype(jnp.bfloat16))
    bias_p = jnp.zeros((1, v_pad), jnp.float32).at[0, :v].set(
        lin_bias.astype(jnp.float32))

    meta = {"v": int(v), "d": int(d), "d_pad": int(d_pad),
            "v_pad": int(v_pad), "tile_v": int(tile_v)}
    return emb_p, w_t_p, bias_p, meta


def skipgram_forward_prepared(x_idx, emb_p, w_t_p, bias_p, meta, *, tb=None):
    """Batched skip-gram forward: x_idx (B,) int32 -> (B, V) f32 log-probs.
    For B == 1 this matches skipgramModel.forward exactly (one row)."""
    v_actual = meta["v"]
    d_pad = meta["d_pad"]
    v_pad = meta["v_pad"]
    tile_v = meta["tile_v"]

    batch = int(x_idx.shape[0])
    if tb is None:
        tb = _choose_tb(batch, v_pad)
    b_pad = _round_up(batch, tb)
    n_bt = b_pad // tb
    n_vt = v_pad // tile_v

    # Bounds-safe indices (review correctness concern #1), padded to a full tile.
    idx = jnp.clip(x_idx.astype(jnp.int32), 0, emb_p.shape[0] - 1)
    if b_pad != batch:
        idx = jnp.pad(idx, (0, b_pad - batch))

    def kernel(idx_ref, emb_hbm, w_ref, bias_ref, out_ref,
               e_buf, dma_sems, m_acc, l_acc):
        bt = pl.program_id(0)
        j = pl.program_id(1)

        @pl.when(j == 0)
        def _gather_and_init():
            # Init online-softmax accumulators for this batch tile.
            m_acc[...] = jnp.full_like(m_acc, -jnp.inf)
            l_acc[...] = jnp.zeros_like(l_acc)
            # Manual DMA gather of the TB embedding rows (indices from SMEM).
            copies = []
            for b in range(tb):
                tok = idx_ref[bt * tb + b]
                copies.append(pltpu.make_async_copy(
                    emb_hbm.at[tok], e_buf.at[b], dma_sems.at[b]))
            for cp in copies:
                cp.start()
            for cp in copies:
                cp.wait()

        # (TB, D_pad) bf16 @ (D_pad, TILE_V) bf16 -> f32 on the MXU.
        e = e_buf[...].astype(jnp.bfloat16)
        logits = jnp.dot(e, w_ref[...], preferred_element_type=jnp.float32)
        logits = logits + bias_ref[...]                       # (TB, TILE_V) f32

        # Mask padded vocab lanes before max/sum (review correctness concern #2).
        if v_pad != v_actual:
            col = jax.lax.broadcasted_iota(jnp.int32, (tb, tile_v), 1) + j * tile_v
            z = jnp.where(col < v_actual, logits, jnp.float32(-1e30))
        else:
            z = logits

        # Online log-softmax accumulators (running max + rescaled sum).
        m_old = m_acc[...]
        m_new = jnp.maximum(m_old, jnp.max(z, axis=-1, keepdims=True))
        l_acc[...] = (l_acc[...] * jnp.exp(m_old - m_new)
                      + jnp.sum(jnp.exp(z - m_new), axis=-1, keepdims=True))
        m_acc[...] = m_new

        # Stage raw logits into the resident, lane-dense output slab.
        off = pl.multiple_of(j * tile_v, tile_v)
        out_ref[:, pl.ds(off, tile_v)] = logits

        @pl.when(j == pl.num_programs(1) - 1)
        def _finalize():
            lse = m_acc[...] + jnp.log(l_acc[...])            # (TB, 1) f32
            out_ref[...] = out_ref[...] - lse                 # in-place normalize

    grid_spec = pltpu.PrefetchScalarGridSpec(
        num_scalar_prefetch=1,                                 # idx -> SMEM
        grid=(n_bt, n_vt),                                     # reduction axis last
        in_specs=[
            pl.BlockSpec(memory_space=pl.ANY),                 # emb table stays in HBM
            pl.BlockSpec((d_pad, tile_v), lambda bt, j, idx: (0, j)),   # W_T tile
            pl.BlockSpec((1, tile_v),     lambda bt, j, idx: (0, j)),   # bias tile
        ],
        out_specs=pl.BlockSpec((tb, v_pad), lambda bt, j, idx: (bt, 0)),
        scratch_shapes=[
            pltpu.VMEM((tb, d_pad), jnp.float32),              # gathered embeddings
            pltpu.SemaphoreType.DMA((tb,)),                    # gather semaphores
            pltpu.VMEM((tb, 1), jnp.float32),                  # running max
            pltpu.VMEM((tb, 1), jnp.float32),                  # running (rescaled) sum
        ],
    )

    cost = pl.CostEstimate(
        flops=int(2 * b_pad * d_pad * v_pad),
        transcendentals=int(b_pad * v_pad),
        bytes_accessed=int(b_pad * d_pad * 4            # gathered embedding rows
                           + n_bt * d_pad * v_pad * 2   # bf16 weight stream / batch tile
                           + n_bt * v_pad * 4           # bias
                           + b_pad * v_pad * 4),        # log-prob output
    )

    out = pl.pallas_call(
        kernel,
        out_shape=jax.ShapeDtypeStruct((b_pad, v_pad), jnp.float32),
        grid_spec=grid_spec,
        compiler_params=pltpu.CompilerParams(
            dimension_semantics=("parallel", "arbitrary"),     # batch || , vocab = reduction
            vmem_limit_bytes=32 * 1024 * 1024,
        ),
        cost_estimate=cost,
    )(idx, emb_p, w_t_p, bias_p)

    return out[:batch, :v_actual]


def skipgram_forward(x_idx, emb_weight, lin_weight, lin_bias):
    """Convenience wrapper mirroring skipgramModel.forward for a single word
    index -> (1, V) log-probs. NOTE: prepare_params is a one-time layout prep;
    in a real training/inference loop hoist it out and call
    skipgram_forward_prepared directly (avoids a per-call transpose)."""
    emb_p, w_t_p, bias_p, meta = prepare_params(emb_weight, lin_weight, lin_bias)
    x = jnp.atleast_1d(jnp.asarray(x_idx, dtype=jnp.int32))
    lp = skipgram_forward_prepared(x, emb_p, w_t_p, bias_p, meta)
    return lp.reshape(1, -1) if x.shape[0] == 1 else lp


def skipgram_forward_ref(x_idx, emb_weight, lin_weight, lin_bias):
    """Pure-JAX f32 reference mirroring the PyTorch forward (per token)."""
    e = emb_weight[jnp.atleast_1d(x_idx)]                      # (B, D)
    out = e @ lin_weight.T + lin_bias[None, :]                 # (B, V)
    return jax.nn.log_softmax(out, axis=-1)


if __name__ == "__main__":
    # Small deterministic setup; V NOT a multiple of 128 and D=10 (module
    # default) to exercise the vocab/embedding padding + masking paths.
    VOCAB_SIZE = 200
    EMBED_DIM = 10

    key = jax.random.PRNGKey(0)
    k_emb, k_w, k_b = jax.random.split(key, 3)

    # nn.init.uniform_ defaults to U[0, 1) for embedding and linear weight.
    emb_weight = jax.random.uniform(k_emb, (VOCAB_SIZE, EMBED_DIM), dtype=jnp.float32)
    lin_weight = jax.random.uniform(k_w, (VOCAB_SIZE, EMBED_DIM), dtype=jnp.float32)
    # nn.Linear default bias init: U[-1/sqrt(in_features), 1/sqrt(in_features)].
    bound = 1.0 / float(jnp.sqrt(jnp.float32(EMBED_DIM)))
    lin_bias = jax.random.uniform(k_b, (VOCAB_SIZE,), dtype=jnp.float32,
                                  minval=-bound, maxval=bound)

    # One-time layout prep (hoisted out of the per-call path, per the review).
    emb_p, w_t_p, bias_p, meta = prepare_params(emb_weight, lin_weight, lin_bias)

    # (1) Module-semantics path: one center-word index -> (1, V) log-probs.
    x1 = jnp.array([3], dtype=jnp.int32)
    lp1 = jax.block_until_ready(
        skipgram_forward_prepared(x1, emb_p, w_t_p, bias_p, meta))
    ref1 = skipgram_forward_ref(x1, emb_weight, lin_weight, lin_bias)
    assert lp1.shape == (1, VOCAB_SIZE)
    # bf16 weight streaming => looser tolerance vs the f32 reference.
    assert jnp.allclose(lp1, ref1, atol=3e-2), float(jnp.max(jnp.abs(lp1 - ref1)))
    assert jnp.allclose(jnp.sum(jnp.exp(lp1), axis=-1), 1.0, atol=1e-3)

    # (2) Batched path: amortizes the weight stream over several tokens.
    xb = jnp.array([3, 0, VOCAB_SIZE - 1, 17, 42], dtype=jnp.int32)
    lpb = jax.block_until_ready(
        skipgram_forward_prepared(xb, emb_p, w_t_p, bias_p, meta))
    refb = skipgram_forward_ref(xb, emb_weight, lin_weight, lin_bias)
    assert lpb.shape == (int(xb.shape[0]), VOCAB_SIZE)
    assert jnp.allclose(lpb, refb, atol=3e-2), float(jnp.max(jnp.abs(lpb - refb)))

    print("KERNEL_OK")
</pallas_src>

<mosaic_0001>
module attributes {stable_mosaic.version = 11 : i64} {
  func.func @kernel(%arg0: i32, %arg1: i32, %arg2: memref<8xi32, #tpu.memory_space<smem>>, %arg3: memref<200x128xf32, #tpu.memory_space<any>>, %arg4: memref<128x256xbf16, #tpu.memory_space<vmem>>, %arg5: memref<1x256xf32, #tpu.memory_space<vmem>>, %arg6: memref<8x256xf32, #tpu.memory_space<vmem>>, %arg7: memref<8x128xf32, #tpu.memory_space<vmem>>, %arg8: memref<8x!tpu.dma_semaphore, #tpu.memory_space<semaphore_mem>>, %arg9: memref<8x1xf32, #tpu.memory_space<vmem>>, %arg10: memref<8x1xf32, #tpu.memory_space<vmem>>) attributes {dimension_semantics = [#tpu.dimension_semantics<parallel>, #tpu.dimension_semantics<arbitrary>], iteration_bounds = array<i64: 1, 1>, scalar_prefetch = 1 : i64, scratch_operands = 4 : i64, tpu.core_type = #tpu.core_type<tc>, window_params = [{}, {transform_indices = @transform_1, window_bounds = array<i64: 128, 256>}, {transform_indices = @transform_2, window_bounds = array<i64: 1, 256>}, {transform_indices = @transform_3, window_bounds = array<i64: 8, 256>}]} {
    %c0_i32 = arith.constant 0 : i32
    %0 = arith.cmpi eq, %arg1, %c0_i32 : i32
    %1 = arith.extui %0 : i1 to i32
    %c0_i32_0 = arith.constant 0 : i32
    %2 = arith.cmpi ne, %1, %c0_i32_0 : i32
    scf.if %2 {
      %cst_21 = arith.constant 0xFF800000 : f32
      %41 = vector.broadcast %cst_21 : f32 to vector<8x1xf32>
      %c0_22 = arith.constant 0 : index
      %c0_23 = arith.constant 0 : index
      %42 = vector.load %arg9[%c0_22, %c0_23] : memref<8x1xf32, #tpu.memory_space<vmem>>, vector<8x1xf32>
      tpu.vector_store %arg9[%c0_22, %c0_23], %41 {strides = array<i32>} : memref<8x1xf32, #tpu.memory_space<vmem>>, vector<8x1xf32>,
      %cst_24 = arith.constant 0.000000e+00 : f32
      %43 = vector.broadcast %cst_24 : f32 to vector<8x1xf32>
      %c0_25 = arith.constant 0 : index
      %c0_26 = arith.constant 0 : index
      %44 = vector.load %arg10[%c0_25, %c0_26] : memref<8x1xf32, #tpu.memory_space<vmem>>, vector<8x1xf32>
      tpu.vector_store %arg10[%c0_25, %c0_26], %43 {strides = array<i32>} : memref<8x1xf32, #tpu.memory_space<vmem>>, vector<8x1xf32>,
      %c8_i32 = arith.constant 8 : i32
      %45 = arith.muli %arg0, %c8_i32 : i32
      %c0_i32_27 = arith.constant 0 : i32
      %46 = arith.addi %45, %c0_i32_27 : i32
      %47 = arith.index_cast %46 : i32 to index
      %48 = memref.load %arg2[%47] : memref<8xi32, #tpu.memory_space<smem>>
      %c8_i32_28 = arith.constant 8 : i32
      %49 = arith.muli %arg0, %c8_i32_28 : i32
      %c1_i32 = arith.constant 1 : i32
      %50 = arith.addi %49, %c1_i32 : i32
      %51 = arith.index_cast %50 : i32 to index
      %52 = memref.load %arg2[%51] : memref<8xi32, #tpu.memory_space<smem>>
      %c8_i32_29 = arith.constant 8 : i32
      %53 = arith.muli %arg0, %c8_i32_29 : i32
      %c2_i32 = arith.constant 2 : i32
      %54 = arith.addi %53, %c2_i32 : i32
      %55 = arith.index_cast %54 : i32 to index
      %56 = memref.load %arg2[%55] : memref<8xi32, #tpu.memory_space<smem>>
      %c8_i32_30 = arith.constant 8 : i32
      %57 = arith.muli %arg0, %c8_i32_30 : i32
      %c3_i32 = arith.constant 3 : i32
      %58 = arith.addi %57, %c3_i32 : i32
      %59 = arith.index_cast %58 : i32 to index
      %60 = memref.load %arg2[%59] : memref<8xi32, #tpu.memory_space<smem>>
      %c8_i32_31 = arith.constant 8 : i32
      %61 = arith.muli %arg0, %c8_i32_31 : i32
      %c4_i32 = arith.constant 4 : i32
      %62 = arith.addi %61, %c4_i32 : i32
      %63 = arith.index_cast %62 : i32 to index
      %64 = memref.load %arg2[%63] : memref<8xi32, #tpu.memory_space<smem>>
      %c8_i32_32 = arith.constant 8 : i32
      %65 = arith.muli %arg0, %c8_i32_32 : i32
      %c5_i32 = arith.constant 5 : i32
      %66 = arith.addi %65, %c5_i32 : i32
      %67 = arith.index_cast %66 : i32 to index
      %68 = memref.load %arg2[%67] : memref<8xi32, #tpu.memory_space<smem>>
      %c8_i32_33 = arith.constant 8 : i32
      %69 = arith.muli %arg0, %c8_i32_33 : i32
      %c6_i32 = arith.constant 6 : i32
      %70 = arith.addi %69, %c6_i32 : i32
      %71 = arith.index_cast %70 : i32 to index
      %72 = memref.load %arg2[%71] : memref<8xi32, #tpu.memory_space<smem>>
      %c8_i32_34 = arith.constant 8 : i32
      %73 = arith.muli %arg0, %c8_i32_34 : i32
      %c7_i32 = arith.constant 7 : i32
      %74 = arith.addi %73, %c7_i32 : i32
      %75 = arith.index_cast %74 : i32 to index
      %76 = memref.load %arg2[%75] : memref<8xi32, #tpu.memory_space<smem>>
      %c0_i32_35 = arith.constant 0 : i32
      %c0_i32_36 = arith.constant 0 : i32
      %c0_i32_37 = arith.constant 0 : i32
      %77 = tpu.memref_slice %arg3[%48, %c0_i32_37] : memref<200x128xf32, #tpu.memory_space<any>> -> memref<1x128xf32, #tpu.memory_space<any>>
      %78 = tpu.memref_squeeze %77 : memref<1x128xf32, #tpu.memory_space<any>> -> memref<128xf32, #tpu.memory_space<any>>
      %c0_i32_38 = arith.constant 0 : i32
      %79 = tpu.memref_slice %arg7[%c0_i32_35, %c0_i32_38] : memref<8x128xf32, #tpu.memory_space<vmem>> -> memref<1x128xf32, #tpu.memory_space<vmem>>
      %80 = tpu.memref_squeeze %79 : memref<1x128xf32, #tpu.memory_space<vmem>> -> memref<128xf32, #tpu.memory_space<vmem>>
      %81 = tpu.memref_slice %arg8[%c0_i32_36] : memref<8x!tpu.dma_semaphore, #tpu.memory_space<semaphore_mem>> -> memref<1x!tpu.dma_semaphore, #tpu.memory_space<semaphore_mem>>
      %82 = tpu.memref_squeeze %81 : memref<1x!tpu.dma_semaphore, #tpu.memory_space<semaphore_mem>> -> memref<!tpu.dma_semaphore, #tpu.memory_space<semaphore_mem>>
      tpu.enqueue_dma source(%78 : memref<128xf32, #tpu.memory_space<any>>) target(%80 : memref<128xf32, #tpu.memory_space<vmem>>) target_semaphore(%82 : memref<!tpu.dma_semaphore, #tpu.memory_space<semaphore_mem>>)
      %c1_i32_39 = arith.constant 1 : i32
      %c1_i32_40 = arith.constant 1 : i32
      %c0_i32_41 = arith.constant 0 : i32
      %83 = tpu.memref_slice %arg3[%52, %c0_i32_41] : memref<200x128xf32, #tpu.memory_space<any>> -> memref<1x128xf32, #tpu.memory_space<any>>
      %84 = tpu.memref_squeeze %83 : memref<1x128xf32, #tpu.memory_space<any>> -> memref<128xf32, #tpu.memory_space<any>>
      %c0_i32_42 = arith.constant 0 : i32
      %85 = tpu.memref_slice %arg7[%c1_i32_39, %c0_i32_42] : memref<8x128xf32, #tpu.memory_space<vmem>> -> memref<1x128xf32, #tpu.memory_space<vmem>>
      %86 = tpu.memref_squeeze %85 : memref<1x128xf32, #tpu.memory_space<vmem>> -> memref<128xf32, #tpu.memory_space<vmem>>
      %87 = tpu.memref_slice %arg8[%c1_i32_40] : memref<8x!tpu.dma_semaphore, #tpu.memory_space<semaphore_mem>> -> memref<1x!tpu.dma_semaphore, #tpu.memory_space<semaphore_mem>>
      %88 = tpu.memref_squeeze %87 : memref<1x!tpu.dma_semaphore, #tpu.memory_space<semaphore_mem>> -> memref<!tpu.dma_semaphore, #tpu.memory_space<semaphore_mem>>
      tpu.enqueue_dma source(%84 : memref<128xf32, #tpu.memory_space<any>>) target(%86 : memref<128xf32, #tpu.memory_space<vmem>>) target_semaphore(%88 : memref<!tpu.dma_semaphore, #tpu.memory_space<semaphore_mem>>)
      %c2_i32_43 = arith.constant 2 : i32
      %c2_i32_44 = arith.constant 2 : i32
      %c0_i32_45 = arith.constant 0 : i32
      %89 = tpu.memref_slice %arg3[%56, %c0_i32_45] : memref<200x128xf32, #tpu.memory_space<any>> -> memref<1x128xf32, #tpu.memory_space<any>>
      %90 = tpu.memref_squeeze %89 : memref<1x128xf32, #tpu.memory_space<any>> -> memref<128xf32, #tpu.memory_space<any>>
      %c0_i32_46 = arith.constant 0 : i32
      %91 = tpu.memref_slice %arg7[%c2_i32_43, %c0_i32_46] : memref<8x128xf32, #tpu.memory_space<vmem>> -> memref<1x128xf32, #tpu.memory_space<vmem>>
      %92 = tpu.memref_squeeze %91 : memref<1x128xf32, #tpu.memory_space<vmem>> -> memref<128xf32, #tpu.memory_space<vmem>>
      %93 = tpu.memref_slice %arg8[%c2_i32_44] : memref<8x!tpu.dma_semaphore, #tpu.memory_space<semaphore_mem>> -> memref<1x!tpu.dma_semaphore, #tpu.memory_space<semaphore_mem>>
      %94 = tpu.memref_squeeze %93 : memref<1x!tpu.dma_semaphore, #tpu.memory_space<semaphore_mem>> -> memref<!tpu.dma_semaphore, #tpu.memory_space<semaphore_mem>>
      tpu.enqueue_dma source(%90 : memref<128xf32, #tpu.memory_space<any>>) target(%92 : memref<128xf32, #tpu.memory_space<vmem>>) target_semaphore(%94 : memref<!tpu.dma_semaphore, #tpu.memory_space<semaphore_mem>>)
      %c3_i32_47 = arith.constant 3 : i32
      %c3_i32_48 = arith.constant 3 : i32
      %c0_i32_49 = arith.constant 0 : i32
      %95 = tpu.memref_slice %arg3[%60, %c0_i32_49] : memref<200x128xf32, #tpu.memory_space<any>> -> memref<1x128xf32, #tpu.memory_space<any>>
      %96 = tpu.memref_squeeze %95 : memref<1x128xf32, #tpu.memory_space<any>> -> memref<128xf32, #tpu.memory_space<any>>
      %c0_i32_50 = arith.constant 0 : i32
      %97 = tpu.memref_slice %arg7[%c3_i32_47, %c0_i32_50] : memref<8x128xf32, #tpu.memory_space<vmem>> -> memref<1x128xf32, #tpu.memory_space<vmem>>
      %98 = tpu.memref_squeeze %97 : memref<1x128xf32, #tpu.memory_space<vmem>> -> memref<128xf32, #tpu.memory_space<vmem>>
      %99 = tpu.memref_slice %arg8[%c3_i32_48] : memref<8x!tpu.dma_semaphore, #tpu.memory_space<semaphore_mem>> -> memref<1x!tpu.dma_semaphore, #tpu.memory_space<semaphore_mem>>
      %100 = tpu.memref_squeeze %99 : memref<1x!tpu.dma_semaphore, #tpu.memory_space<semaphore_mem>> -> memref<!tpu.dma_semaphore, #tpu.memory_space<semaphore_mem>>
      tpu.enqueue_dma source(%96 : memref<128xf32, #tpu.memory_space<any>>) target(%98 : memref<128xf32, #tpu.memory_space<vmem>>) target_semaphore(%100 : memref<!tpu.dma_semaphore, #tpu.memory_space<semaphore_mem>>)
      %c4_i32_51 = arith.constant 4 : i32
      %c4_i32_52 = arith.constant 4 : i32
      %c0_i32_53 = arith.constant 0 : i32
      %101 = tpu.memref_slice %arg3[%64, %c0_i32_53] : memref<200x128xf32, #tpu.memory_space<any>> -> memref<1x128xf32, #tpu.memory_space<any>>
      %102 = tpu.memref_squeeze %101 : memref<1x128xf32, #tpu.memory_space<any>> -> memref<128xf32, #tpu.memory_space<any>>
      %c0_i32_54 = arith.constant 0 : i32
      %103 = tpu.memref_slice %arg7[%c4_i32_51, %c0_i32_54] : memref<8x128xf32, #tpu.memory_space<vmem>> -> memref<1x128xf32, #tpu.memory_space<vmem>>
      %104 = tpu.memref_squeeze %103 : memref<1x128xf32, #tpu.memory_space<vmem>> -> memref<128xf32, #tpu.memory_space<vmem>>
      %105 = tpu.memref_slice %arg8[%c4_i32_52] : memref<8x!tpu.dma_semaphore, #tpu.memory_space<semaphore_mem>> -> memref<1x!tpu.dma_semaphore, #tpu.memory_space<semaphore_mem>>
      %106 = tpu.memref_squeeze %105 : memref<1x!tpu.dma_semaphore, #tpu.memory_space<semaphore_mem>> -> memref<!tpu.dma_semaphore, #tpu.memory_space<semaphore_mem>>
      tpu.enqueue_dma source(%102 : memref<128xf32, #tpu.memory_space<any>>) target(%104 : memref<128xf32, #tpu.memory_space<vmem>>) target_semaphore(%106 : memref<!tpu.dma_semaphore, #tpu.memory_space<semaphore_mem>>)
      %c5_i32_55 = arith.constant 5 : i32
      %c5_i32_56 = arith.constant 5 : i32
      %c0_i32_57 = arith.constant 0 : i32
      %107 = tpu.memref_slice %arg3[%68, %c0_i32_57] : memref<200x128xf32, #tpu.memory_space<any>> -> memref<1x128xf32, #tpu.memory_space<any>>
      %108 = tpu.memref_squeeze %107 : memref<1x128xf32, #tpu.memory_space<any>> -> memref<128xf32, #tpu.memory_space<any>>
      %c0_i32_58 = arith.constant 0 : i32
      %109 = tpu.memref_slice %arg7[%c5_i32_55, %c0_i32_58] : memref<8x128xf32, #tpu.memory_space<vmem>> -> memref<1x128xf32, #tpu.memory_space<vmem>>
      %110 = tpu.memref_squeeze %109 : memref<1x128xf32, #tpu.memory_space<vmem>> -> memref<128xf32, #tpu.memory_space<vmem>>
      %111 = tpu.memref_slice %arg8[%c5_i32_56] : memref<8x!tpu.dma_semaphore, #tpu.memory_space<semaphore_mem>> -> memref<1x!tpu.dma_semaphore, #tpu.memory_space<semaphore_mem>>
      %112 = tpu.memref_squeeze %111 : memref<1x!tpu.dma_semaphore, #tpu.memory_space<semaphore_mem>> -> memref<!tpu.dma_semaphore, #tpu.memory_space<semaphore_mem>>
      tpu.enqueue_dma source(%108 : memref<128xf32, #tpu.memory_space<any>>) target(%110 : memref<128xf32, #tpu.memory_space<vmem>>) target_semaphore(%112 : memref<!tpu.dma_semaphore, #tpu.memory_space<semaphore_mem>>)
      %c6_i32_59 = arith.constant 6 : i32
      %c6_i32_60 = arith.constant 6 : i32
      %c0_i32_61 = arith.constant 0 : i32
      %113 = tpu.memref_slice %arg3[%72, %c0_i32_61] : memref<200x128xf32, #tpu.memory_space<any>> -> memref<1x128xf32, #tpu.memory_space<any>>
      %114 = tpu.memref_squeeze %113 : memref<1x128xf32, #tpu.memory_space<any>> -> memref<128xf32, #tpu.memory_space<any>>
      %c0_i32_62 = arith.constant 0 : i32
      %115 = tpu.memref_slice %arg7[%c6_i32_59, %c0_i32_62] : memref<8x128xf32, #tpu.memory_space<vmem>> -> memref<1x128xf32, #tpu.memory_space<vmem>>
      %116 = tpu.memref_squeeze %115 : memref<1x128xf32, #tpu.memory_space<vmem>> -> memref<128xf32, #tpu.memory_space<vmem>>
      %117 = tpu.memref_slice %arg8[%c6_i32_60] : memref<8x!tpu.dma_semaphore, #tpu.memory_space<semaphore_mem>> -> memref<1x!tpu.dma_semaphore, #tpu.memory_space<semaphore_mem>>
      %118 = tpu.memref_squeeze %117 : memref<1x!tpu.dma_semaphore, #tpu.memory_space<semaphore_mem>> -> memref<!tpu.dma_semaphore, #tpu.memory_space<semaphore_mem>>
      tpu.enqueue_dma source(%114 : memref<128xf32, #tpu.memory_space<any>>) target(%116 : memref<128xf32, #tpu.memory_space<vmem>>) target_semaphore(%118 : memref<!tpu.dma_semaphore, #tpu.memory_space<semaphore_mem>>)
      %c7_i32_63 = arith.constant 7 : i32
      %c7_i32_64 = arith.constant 7 : i32
      %c0_i32_65 = arith.constant 0 : i32
      %119 = tpu.memref_slice %arg3[%76, %c0_i32_65] : memref<200x128xf32, #tpu.memory_space<any>> -> memref<1x128xf32, #tpu.memory_space<any>>
      %120 = tpu.memref_squeeze %119 : memref<1x128xf32, #tpu.memory_space<any>> -> memref<128xf32, #tpu.memory_space<any>>
      %c0_i32_66 = arith.constant 0 : i32
      %121 = tpu.memref_slice %arg7[%c7_i32_63, %c0_i32_66] : memref<8x128xf32, #tpu.memory_space<vmem>> -> memref<1x128xf32, #tpu.memory_space<vmem>>
      %122 = tpu.memref_squeeze %121 : memref<1x128xf32, #tpu.memory_space<vmem>> -> memref<128xf32, #tpu.memory_space<vmem>>
      %123 = tpu.memref_slice %arg8[%c7_i32_64] : memref<8x!tpu.dma_semaphore, #tpu.memory_space<semaphore_mem>> -> memref<1x!tpu.dma_semaphore, #tpu.memory_space<semaphore_mem>>
      %124 = tpu.memref_squeeze %123 : memref<1x!tpu.dma_semaphore, #tpu.memory_space<semaphore_mem>> -> memref<!tpu.dma_semaphore, #tpu.memory_space<semaphore_mem>>
      tpu.enqueue_dma source(%120 : memref<128xf32, #tpu.memory_space<any>>) target(%122 : memref<128xf32, #tpu.memory_space<vmem>>) target_semaphore(%124 : memref<!tpu.dma_semaphore, #tpu.memory_space<semaphore_mem>>)
      %c0_i32_67 = arith.constant 0 : i32
      %c0_i32_68 = arith.constant 0 : i32
      %c0_i32_69 = arith.constant 0 : i32
      %125 = tpu.memref_slice %arg3[%48, %c0_i32_69] : memref<200x128xf32, #tpu.memory_space<any>> -> memref<1x128xf32, #tpu.memory_space<any>>
      %126 = tpu.memref_squeeze %125 : memref<1x128xf32, #tpu.memory_space<any>> -> memref<128xf32, #tpu.memory_space<any>>
      %c0_i32_70 = arith.constant 0 : i32
      %127 = tpu.memref_slice %arg7[%c0_i32_67, %c0_i32_70] : memref<8x128xf32, #tpu.memory_space<vmem>> -> memref<1x128xf32, #tpu.memory_space<vmem>>
      %128 = tpu.memref_squeeze %127 : memref<1x128xf32, #tpu.memory_space<vmem>> -> memref<128xf32, #tpu.memory_space<vmem>>
      %129 = tpu.memref_slice %arg8[%c0_i32_68] : memref<8x!tpu.dma_semaphore, #tpu.memory_space<semaphore_mem>> -> memref<1x!tpu.dma_semaphore, #tpu.memory_space<semaphore_mem>>
      %130 = tpu.memref_squeeze %129 : memref<1x!tpu.dma_semaphore, #tpu.memory_space<semaphore_mem>> -> memref<!tpu.dma_semaphore, #tpu.memory_space<semaphore_mem>>
      tpu.wait_dma2 semaphore(%130 : memref<!tpu.dma_semaphore, #tpu.memory_space<semaphore_mem>>) src(%126 : memref<128xf32, #tpu.memory_space<any>>) dst(%128 : memref<128xf32, #tpu.memory_space<vmem>>)
      %c1_i32_71 = arith.constant 1 : i32
      %c1_i32_72 = arith.constant 1 : i32
      %c0_i32_73 = arith.constant 0 : i32
      %131 = tpu.memref_slice %arg3[%52, %c0_i32_73] : memref<200x128xf32, #tpu.memory_space<any>> -> memref<1x128xf32, #tpu.memory_space<any>>
      %132 = tpu.memref_squeeze %131 : memref<1x128xf32, #tpu.memory_space<any>> -> memref<128xf32, #tpu.memory_space<any>>
      %c0_i32_74 = arith.constant 0 : i32
      %133 = tpu.memref_slice %arg7[%c1_i32_71, %c0_i32_74] : memref<8x128xf32, #tpu.memory_space<vmem>> -> memref<1x128xf32, #tpu.memory_space<vmem>>
      %134 = tpu.memref_squeeze %133 : memref<1x128xf32, #tpu.memory_space<vmem>> -> memref<128xf32, #tpu.memory_space<vmem>>
      %135 = tpu.memref_slice %arg8[%c1_i32_72] : memref<8x!tpu.dma_semaphore, #tpu.memory_space<semaphore_mem>> -> memref<1x!tpu.dma_semaphore, #tpu.memory_space<semaphore_mem>>
      %136 = tpu.memref_squeeze %135 : memref<1x!tpu.dma_semaphore, #tpu.memory_space<semaphore_mem>> -> memref<!tpu.dma_semaphore, #tpu.memory_space<semaphore_mem>>
      tpu.wait_dma2 semaphore(%136 : memref<!tpu.dma_semaphore, #tpu.memory_space<semaphore_mem>>) src(%132 : memref<128xf32, #tpu.memory_space<any>>) dst(%134 : memref<128xf32, #tpu.memory_space<vmem>>)
      %c2_i32_75 = arith.constant 2 : i32
      %c2_i32_76 = arith.constant 2 : i32
      %c0_i32_77 = arith.constant 0 : i32
      %137 = tpu.memref_slice %arg3[%56, %c0_i32_77] : memref<200x128xf32, #tpu.memory_space<any>> -> memref<1x128xf32, #tpu.memory_space<any>>
      %138 = tpu.memref_squeeze %137 : memref<1x128xf32, #tpu.memory_space<any>> -> memref<128xf32, #tpu.memory_space<any>>
      %c0_i32_78 = arith.constant 0 : i32
      %139 = tpu.memref_slice %arg7[%c2_i32_75, %c0_i32_78] : memref<8x128xf32, #tpu.memory_space<vmem>> -> memref<1x128xf32, #tpu.memory_space<vmem>>
      %140 = tpu.memref_squeeze %139 : memref<1x128xf32, #tpu.memory_space<vmem>> -> memref<128xf32, #tpu.memory_space<vmem>>
      %141 = tpu.memref_slice %arg8[%c2_i32_76] : memref<8x!tpu.dma_semaphore, #tpu.memory_space<semaphore_mem>> -> memref<1x!tpu.dma_semaphore, #tpu.memory_space<semaphore_mem>>
      %142 = tpu.memref_squeeze %141 : memref<1x!tpu.dma_semaphore, #tpu.memory_space<semaphore_mem>> -> memref<!tpu.dma_semaphore, #tpu.memory_space<semaphore_mem>>
      tpu.wait_dma2 semaphore(%142 : memref<!tpu.dma_semaphore, #tpu.memory_space<semaphore_mem>>) src(%138 : memref<128xf32, #tpu.memory_space<any>>) dst(%140 : memref<128xf32, #tpu.memory_space<vmem>>)
      %c3_i32_79 = arith.constant 3 : i32
      %c3_i32_80 = arith.constant 3 : i32
      %c0_i32_81 = arith.constant 0 : i32
      %143 = tpu.memref_slice %arg3[%60, %c0_i32_81] : memref<200x128xf32, #tpu.memory_space<any>> -> memref<1x128xf32, #tpu.memory_space<any>>
      %144 = tpu.memref_squeeze %143 : memref<1x128xf32, #tpu.memory_space<any>> -> memref<128xf32, #tpu.memory_space<any>>
      %c0_i32_82 = arith.constant 0 : i32
      %145 = tpu.memref_slice %arg7[%c3_i32_79, %c0_i32_82] : memref<8x128xf32, #tpu.memory_space<vmem>> -> memref<1x128xf32, #tpu.memory_space<vmem>>
      %146 = tpu.memref_squeeze %145 : memref<1x128xf32, #tpu.memory_space<vmem>> -> memref<128xf32, #tpu.memory_space<vmem>>
      %147 = tpu.memref_slice %arg8[%c3_i32_80] : memref<8x!tpu.dma_semaphore, #tpu.memory_space<semaphore_mem>> -> memref<1x!tpu.dma_semaphore, #tpu.memory_space<semaphore_mem>>
      %148 = tpu.memref_squeeze %147 : memref<1x!tpu.dma_semaphore, #tpu.memory_space<semaphore_mem>> -> memref<!tpu.dma_semaphore, #tpu.memory_space<semaphore_mem>>
      tpu.wait_dma2 semaphore(%148 : memref<!tpu.dma_semaphore, #tpu.memory_space<semaphore_mem>>) src(%144 : memref<128xf32, #tpu.memory_space<any>>) dst(%146 : memref<128xf32, #tpu.memory_space<vmem>>)
      %c4_i32_83 = arith.constant 4 : i32
      %c4_i32_84 = arith.constant 4 : i32
      %c0_i32_85 = arith.constant 0 : i32
      %149 = tpu.memref_slice %arg3[%64, %c0_i32_85] : memref<200x128xf32, #tpu.memory_space<any>> -> memref<1x128xf32, #tpu.memory_space<any>>
      %150 = tpu.memref_squeeze %149 : memref<1x128xf32, #tpu.memory_space<any>> -> memref<128xf32, #tpu.memory_space<any>>
      %c0_i32_86 = arith.constant 0 : i32
      %151 = tpu.memref_slice %arg7[%c4_i32_83, %c0_i32_86] : memref<8x128xf32, #tpu.memory_space<vmem>> -> memref<1x128xf32, #tpu.memory_space<vmem>>
      %152 = tpu.memref_squeeze %151 : memref<1x128xf32, #tpu.memory_space<vmem>> -> memref<128xf32, #tpu.memory_space<vmem>>
      %153 = tpu.memref_slice %arg8[%c4_i32_84] : memref<8x!tpu.dma_semaphore, #tpu.memory_space<semaphore_mem>> -> memref<1x!tpu.dma_semaphore, #tpu.memory_space<semaphore_mem>>
      %154 = tpu.memref_squeeze %153 : memref<1x!tpu.dma_semaphore, #tpu.memory_space<semaphore_mem>> -> memref<!tpu.dma_semaphore, #tpu.memory_space<semaphore_mem>>
      tpu.wait_dma2 semaphore(%154 : memref<!tpu.dma_semaphore, #tpu.memory_space<semaphore_mem>>) src(%150 : memref<128xf32, #tpu.memory_space<any>>) dst(%152 : memref<128xf32, #tpu.memory_space<vmem>>)
      %c5_i32_87 = arith.constant 5 : i32
      %c5_i32_88 = arith.constant 5 : i32
      %c0_i32_89 = arith.constant 0 : i32
      %155 = tpu.memref_slice %arg3[%68, %c0_i32_89] : memref<200x128xf32, #tpu.memory_space<any>> -> memref<1x128xf32, #tpu.memory_space<any>>
      %156 = tpu.memref_squeeze %155 : memref<1x128xf32, #tpu.memory_space<any>> -> memref<128xf32, #tpu.memory_space<any>>
      %c0_i32_90 = arith.constant 0 : i32
      %157 = tpu.memref_slice %arg7[%c5_i32_87, %c0_i32_90] : memref<8x128xf32, #tpu.memory_space<vmem>> -> memref<1x128xf32, #tpu.memory_space<vmem>>
      %158 = tpu.memref_squeeze %157 : memref<1x128xf32, #tpu.memory_space<vmem>> -> memref<128xf32, #tpu.memory_space<vmem>>
      %159 = tpu.memref_slice %arg8[%c5_i32_88] : memref<8x!tpu.dma_semaphore, #tpu.memory_space<semaphore_mem>> -> memref<1x!tpu.dma_semaphore, #tpu.memory_space<semaphore_mem>>
      %160 = tpu.memref_squeeze %159 : memref<1x!tpu.dma_semaphore, #tpu.memory_space<semaphore_mem>> -> memref<!tpu.dma_semaphore, #tpu.memory_space<semaphore_mem>>
      tpu.wait_dma2 semaphore(%160 : memref<!tpu.dma_semaphore, #tpu.memory_space<semaphore_mem>>) src(%156 : memref<128xf32, #tpu.memory_space<any>>) dst(%158 : memref<128xf32, #tpu.memory_space<vmem>>)
      %c6_i32_91 = arith.constant 6 : i32
      %c6_i32_92 = arith.constant 6 : i32
      %c0_i32_93 = arith.constant 0 : i32
      %161 = tpu.memref_slice %arg3[%72, %c0_i32_93] : memref<200x128xf32, #tpu.memory_space<any>> -> memref<1x128xf32, #tpu.memory_space<any>>
      %162 = tpu.memref_squeeze %161 : memref<1x128xf32, #tpu.memory_space<any>> -> memref<128xf32, #tpu.memory_space<any>>
      %c0_i32_94 = arith.constant 0 : i32
      %163 = tpu.memref_slice %arg7[%c6_i32_91, %c0_i32_94] : memref<8x128xf32, #tpu.memory_space<vmem>> -> memref<1x128xf32, #tpu.memory_space<vmem>>
      %164 = tpu.memref_squeeze %163 : memref<1x128xf32, #tpu.memory_space<vmem>> -> memref<128xf32, #tpu.memory_space<vmem>>
      %165 = tpu.memref_slice %arg8[%c6_i32_92] : memref<8x!tpu.dma_semaphore, #tpu.memory_space<semaphore_mem>> -> memref<1x!tpu.dma_semaphore, #tpu.memory_space<semaphore_mem>>
      %166 = tpu.memref_squeeze %165 : memref<1x!tpu.dma_semaphore, #tpu.memory_space<semaphore_mem>> -> memref<!tpu.dma_semaphore, #tpu.memory_space<semaphore_mem>>
      tpu.wait_dma2 semaphore(%166 : memref<!tpu.dma_semaphore, #tpu.memory_space<semaphore_mem>>) src(%162 : memref<128xf32, #tpu.memory_space<any>>) dst(%164 : memref<128xf32, #tpu.memory_space<vmem>>)
      %c7_i32_95 = arith.constant 7 : i32
      %c7_i32_96 = arith.constant 7 : i32
      %c0_i32_97 = arith.constant 0 : i32
      %167 = tpu.memref_slice %arg3[%76, %c0_i32_97] : memref<200x128xf32, #tpu.memory_space<any>> -> memref<1x128xf32, #tpu.memory_space<any>>
      %168 = tpu.memref_squeeze %167 : memref<1x128xf32, #tpu.memory_space<any>> -> memref<128xf32, #tpu.memory_space<any>>
      %c0_i32_98 = arith.constant 0 : i32
      %169 = tpu.memref_slice %arg7[%c7_i32_95, %c0_i32_98] : memref<8x128xf32, #tpu.memory_space<vmem>> -> memref<1x128xf32, #tpu.memory_space<vmem>>
      %170 = tpu.memref_squeeze %169 : memref<1x128xf32, #tpu.memory_space<vmem>> -> memref<128xf32, #tpu.memory_space<vmem>>
      %171 = tpu.memref_slice %arg8[%c7_i32_96] : memref<8x!tpu.dma_semaphore, #tpu.memory_space<semaphore_mem>> -> memref<1x!tpu.dma_semaphore, #tpu.memory_space<semaphore_mem>>
      %172 = tpu.memref_squeeze %171 : memref<1x!tpu.dma_semaphore, #tpu.memory_space<semaphore_mem>> -> memref<!tpu.dma_semaphore, #tpu.memory_space<semaphore_mem>>
      tpu.wait_dma2 semaphore(%172 : memref<!tpu.dma_semaphore, #tpu.memory_space<semaphore_mem>>) src(%168 : memref<128xf32, #tpu.memory_space<any>>) dst(%170 : memref<128xf32, #tpu.memory_space<vmem>>)
    } else {
    }
    %c0 = arith.constant 0 : index
    %c0_1 = arith.constant 0 : index
    %3 = vector.load %arg7[%c0, %c0_1] : memref<8x128xf32, #tpu.memory_space<vmem>>, vector<8x128xf32>
    %4 = arith.truncf %3 : vector<8x128xf32> to vector<8x128xbf16>
    %c0_2 = arith.constant 0 : index
    %c0_3 = arith.constant 0 : index
    %5 = vector.load %arg4[%c0_2, %c0_3] : memref<128x256xbf16, #tpu.memory_space<vmem>>, vector<128x256xbf16>
    %cst = arith.constant dense<0.000000e+00> : vector<8x256xf32>
    %6 = tpu.matmul %4, %5, %cst {dimension_numbers = #tpu.dot_dimension_numbers<[1], [0], [0], [1], [0, 0, 1, 1], [], []>} : vector<8x128xbf16>, vector<128x256xbf16>, vector<8x256xf32> -> vector<8x256xf32>
    %c0_4 = arith.constant 0 : index
    %c0_5 = arith.constant 0 : index
    %7 = vector.load %arg5[%c0_4, %c0_5] : memref<1x256xf32, #tpu.memory_space<vmem>>, vector<1x256xf32>
    %8 = vector.broadcast %7 : vector<1x256xf32> to vector<8x256xf32>
    %9 = arith.addf %6, %8 : vector<8x256xf32>
    %10 = tpu.iota {dimensions = array<i32: 1>} : vector<8x256xi32>
    %c256_i32 = arith.constant 256 : i32
    %11 = arith.muli %arg1, %c256_i32 : i32
    %12 = vector.broadcast %11 : i32 to vector<8x256xi32>
    %13 = arith.addi %10, %12 : vector<8x256xi32>
    %c200_i32 = arith.constant 200 : i32
    %14 = vector.broadcast %c200_i32 : i32 to vector<8x256xi32>
    %15 = arith.cmpi slt, %13, %14 : vector<8x256xi32>
    %cst_6 = arith.constant -1.000000e+30 : f32
    %16 = vector.broadcast %cst_6 : f32 to vector<8x256xf32>
    %17 = arith.select %15, %9, %16 : vector<8x256xi1>, vector<8x256xf32>
    %c0_7 = arith.constant 0 : index
    %c0_8 = arith.constant 0 : index
    %18 = vector.load %arg9[%c0_7, %c0_8] : memref<8x1xf32, #tpu.memory_space<vmem>>, vector<8x1xf32>
    %cst_9 = arith.constant dense<0xFF800000> : vector<8xf32>
    %19 = vector.multi_reduction <maximumf>, %17, %cst_9 [1] : vector<8x256xf32> to vector<8xf32>
    %20 = vector.shape_cast %19 : vector<8xf32> to vector<8x1xf32>
    %21 = arith.maximumf %18, %20 : vector<8x1xf32>
    %c0_10 = arith.constant 0 : index
    %c0_11 = arith.constant 0 : index
    %22 = vector.load %arg10[%c0_10, %c0_11] : memref<8x1xf32, #tpu.memory_space<vmem>>, vector<8x1xf32>
    %23 = arith.subf %18, %21 : vector<8x1xf32>
    %24 = math.exp %23 : vector<8x1xf32>
    %25 = arith.mulf %22, %24 : vector<8x1xf32>
    %26 = vector.broadcast %21 : vector<8x1xf32> to vector<8x256xf32>
    %27 = arith.subf %17, %26 : vector<8x256xf32>
    %28 = math.exp %27 : vector<8x256xf32>
    %cst_12 = arith.constant dense<0.000000e+00> : vector<8xf32>
    %29 = vector.multi_reduction <add>, %28, %cst_12 [1] : vector<8x256xf32> to vector<8xf32>
    %30 = vector.shape_cast %29 : vector<8xf32> to vector<8x1xf32>
    %31 = arith.addf %25, %30 : vector<8x1xf32>
    %c0_13 = arith.constant 0 : index
    %c0_14 = arith.constant 0 : index
    %32 = vector.load %arg10[%c0_13, %c0_14] : memref<8x1xf32, #tpu.memory_space<vmem>>, vector<8x1xf32>
    tpu.vector_store %arg10[%c0_13, %c0_14], %31 {strides = array<i32>} : memref<8x1xf32, #tpu.memory_space<vmem>>, vector<8x1xf32>,
    %c0_15 = arith.constant 0 : index
    %c0_16 = arith.constant 0 : index
    %33 = vector.load %arg9[%c0_15, %c0_16] : memref<8x1xf32, #tpu.memory_space<vmem>>, vector<8x1xf32>
    tpu.vector_store %arg9[%c0_15, %c0_16], %21 {strides = array<i32>} : memref<8x1xf32, #tpu.memory_space<vmem>>, vector<8x1xf32>,
    %c256_i32_17 = arith.constant 256 : i32
    %34 = arith.muli %arg1, %c256_i32_17 : i32
    %35 = tpu.assume_multiple %34, 256 : i32
    %c0_18 = arith.constant 0 : index
    %36 = arith.index_cast %35 : i32 to index
    %37 = vector.load %arg6[%c0_18, %36] : memref<8x256xf32, #tpu.memory_space<vmem>>, vector<8x256xf32>
    tpu.vector_store %arg6[%c0_18, %36], %9 {strides = array<i32>} : memref<8x256xf32, #tpu.memory_space<vmem>>, vector<8x256xf32>,
    %c0_i32_19 = arith.constant 0 : i32
    %38 = arith.cmpi eq, %arg1, %c0_i32_19 : i32
    %39 = arith.extui %38 : i1 to i32
    %c0_i32_20 = arith.constant 0 : i32
    %40 = arith.cmpi ne, %39, %c0_i32_20 : i32
    scf.if %40 {
      %c0_21 = arith.constant 0 : index
      %c0_22 = arith.constant 0 : index
      %41 = vector.load %arg9[%c0_21, %c0_22] : memref<8x1xf32, #tpu.memory_space<vmem>>, vector<8x1xf32>
      %c0_23 = arith.constant 0 : index
      %c0_24 = arith.constant 0 : index
      %42 = vector.load %arg10[%c0_23, %c0_24] : memref<8x1xf32, #tpu.memory_space<vmem>>, vector<8x1xf32>
      %43 = math.log %42 : vector<8x1xf32>
      %44 = arith.addf %41, %43 : vector<8x1xf32>
      %c0_25 = arith.constant 0 : index
      %c0_26 = arith.constant 0 : index
      %45 = vector.load %arg6[%c0_25, %c0_26] : memref<8x256xf32, #tpu.memory_space<vmem>>, vector<8x256xf32>
      %46 = vector.broadcast %44 : vector<8x1xf32> to vector<8x256xf32>
      %47 = arith.subf %45, %46 : vector<8x256xf32>
      %c0_27 = arith.constant 0 : index
      %c0_28 = arith.constant 0 : index
      %48 = vector.load %arg6[%c0_27, %c0_28] : memref<8x256xf32, #tpu.memory_space<vmem>>, vector<8x256xf32>
      tpu.vector_store %arg6[%c0_27, %c0_28], %47 {strides = array<i32>} : memref<8x256xf32, #tpu.memory_space<vmem>>, vector<8x256xf32>,
    } else {
    }
    return
  }
  func.func @transform_1(%arg0: i32, %arg1: i32, %arg2: memref<8xi32, #tpu.memory_space<smem>>) -> (i32, i32) {
    %c0_i32 = arith.constant 0 : i32
    %c0_i32_0 = arith.constant 0 : i32
    return %c0_i32, %arg1 : i32, i32
  }
  func.func @transform_2(%arg0: i32, %arg1: i32, %arg2: memref<8xi32, #tpu.memory_space<smem>>) -> (i32, i32) {
    %c0_i32 = arith.constant 0 : i32
    %c0_i32_0 = arith.constant 0 : i32
    return %c0_i32, %arg1 : i32, i32
  }
  func.func @transform_3(%arg0: i32, %arg1: i32, %arg2: memref<8xi32, #tpu.memory_space<smem>>) -> (i32, i32) {
    %c0_i32 = arith.constant 0 : i32
    %c0_i32_0 = arith.constant 0 : i32
    return %arg0, %c0_i32 : i32, i32
  }
}

</mosaic_0001>

<bundles_post_ra>
// kernel: tpu_custom_call.1
= control target key start
LH: loop header
LB: loop body
LE: loop exit
PB: predicated region body
PF: predicated region fallthrough
CT: control target
= control target key end

     0   :  { %s1065_s0 = inlined_call_operand.hbm [shape: s32[8], index: 0, kind: input, shape index: {}]   ;;  %s1066_s1 = inlined_call_operand.hbm [shape: f32[200,128], index: 1, kind: input, shape index: {}]   ;;  %s1067_s2 = inlined_call_operand.hbm [shape: bf16[128,256], index: 2, kind: input, shape index: {}]   ;;  %s1068_s3 = inlined_call_operand.vmem [shape: f32[1,256], index: 3, kind: input, shape index: {}]   ;;  %s1069_s4 = inlined_call_operand.hbm [shape: f32[8,256], index: 4, kind: output, shape index: {}]  }
   0x1   :  { %s582_s17 = scalar_lea.hbm %s1065_s0, 16 }
   0x2   :  { %p583_p0 = scmp.ne.s32.totalorder %s1065_s0, %s582_s17  ;;  %p586_p1 = scmp.lt.u32.totalorder %s582_s17, %s1065_s0 }
   0x4   :  { %p588_p2 = pnand %p586_p1, %p583_p0 }
   0x6   :  { %591 = shalt.err (!%p588_p2)  }
   0x7   :  { %s850_s22 = smov [#allocation7]  }
   0x8   :  { %10 = dma.hbm_to_smem %s1065_s0, 16, %s850_s22, [#allocation6] }
   0x9   :  { %828 = dma.done.wait [#allocation6], 16 }
   0xa   :  { %829 = vsyncadd [#allocation6], 4294967280 }
   0xb   :  { %12 = sfence }
   0xc   :  { %13 = vsyncpa [#allocation9], 0 }
   0xd   :  { %14 = vsyncpa [#allocation10], 0  ;;  %s851_s25 = smov [#allocation8]   ;;  %s592_s29 = scalar_lea.hbm %s1067_s2, 2048 }
   0xe   :  { %s20_s26 = sshll.u32 %s851_s25, 4  ;;  %p593_p3 = scmp.ne.s32.totalorder %s1067_s2, %s592_s29  ;;  %s21_s26 = int_to_ptr.vmem [resolvable:$true] %s20_s26 }
   0xf   :  { %p596_p4 = scmp.lt.u32.totalorder %s592_s29, %s1067_s2 }
  0x11   :  { %p598_p5 = pnand %p596_p4, %p593_p3 }
  0x13   :  { %601 = shalt.err (!%p598_p5)
}
  0x14   :  { %s602_s0 = scalar_lea.vmem %s21_s26, 2048  ;;  %p607_p7 = scmp.lt.s32.totalorder %s21_s26, %s21_s26 }
  0x15   :  { %p603_p6 = scmp.ne.s32.totalorder %s21_s26, %s602_s0  ;;  %p608_p8 = scmp.lt.s32.totalorder %s602_s0, %s602_s0 }
  0x17   :  { %p609_p9 = por %p608_p8, %p607_p7 }
  0x19   :  { %p610_p10 = pnand %p609_p9, %p603_p6 }
  0x1b   :  { %613 = shalt.err (!%p610_p10)
}
  0x1c   :  { %s852_s8 = smov 128   ;;  %s853_s9 = smov 8  }
  0x1d   :  { %26 = dma.hbm_to_vmem [thread:$0]  %s1067_s2, 2048, %s21_s26, [#allocation9], %s852_s8, %s852_s8, %s853_s9  }
  0x1e   :  { %830 = dma.done.wait [#allocation9], 2048  }
  0x1f   :  { %831 = vsyncadd [#allocation9], 4294965248  ;;  %vm37_vm0 = vcmask 7168   ;;  %s41_s12 = sld [smem:[#allocation7]]  ;;  %s854_s13 = smov [#allocation2]   ;;  %v855_v0 = vmov -inf  }
  0x20   :  { %s65_s14 = sshll.u32 %s854_s13, 4  ;;  %38 = vst.msk [vmem:[#allocation4] sm:$0xff] %vm37_vm0, %v855_v0  ;;  %s918_s15 = sld [smem:[#allocation7 + $0x1]]  ;;  %v856_v1 = vmov 0.0   ;;  %s916_s14 = int_to_ptr.vmem [resolvable:$true] %s65_s14 }
  0x21   :  { %39 = vst.msk [vmem:[#allocation5] sm:$0xff] %vm37_vm0, %v856_v1  ;;  %s857_s16 = smov [#allocation2 + $0x1]   ;;  %s921_s2 = sld [smem:[#allocation7 + $0x2]] }
  0x22   :  { %s80_s17 = sshll.u32 %s857_s16, 4  ;;  %s858_s18 = smov [#allocation2 + $0x2]   ;;  %s923_s17 = int_to_ptr.vmem [resolvable:$true] %s80_s17 }
  0x23   :  { %s95_s19 = sshll.u32 %s858_s18, 4  ;;  %s925_s20 = sld [smem:[#allocation7 + $0x3]]  ;;  %s927_s19 = int_to_ptr.vmem [resolvable:$true] %s95_s19 }
  0x24   :  { %s859_s22 = smov [#allocation2 + $0x3]   ;;  %s938_s5 = scalar_lea.hbm %s1066_s1, 3200 }
  0x25   :  { %s500_s21 = sshll.u32 %s41_s12, 4  ;;  %s929_s23 = sshll.u32 %s859_s22, 4  ;;  %s111_s23 = int_to_ptr.vmem [resolvable:$true] %s929_s23 }
  0x26   :  { %s57_s26 = scalar_lea.hbm %s1066_s1, %s500_s21  ;;  %s501_s27 = sshll.u32 %s918_s15, 4 }
  0x27   :  { %s614_s28 = scalar_lea.hbm %s57_s26, 16  ;;  %p617_p12 = scmp.lt.u32.totalorder %s57_s26, %s1066_s1 }
  0x28   :  { %p615_p11 = scmp.ne.s32.totalorder %s57_s26, %s614_s28  ;;  %p618_p13 = scmp.lt.u32.totalorder %s938_s5, %s614_s28 }
  0x29   :  { %p620_p1 = scmp.lt.u32.totalorder %s614_s28, %s57_s26 }
  0x2a   :  { %p619_p0 = por %p618_p13, %p617_p12 }
  0x2c   :  { %p621_p2 = por %p620_p1, %p619_p0 }
  0x2e   :  { %p622_p3 = pnand %p621_p2, %p615_p11 }
  0x30   :  { %625 = shalt.err (!%p622_p3)  }
  0x31   :  { %s626_s0 = scalar_lea.vmem %s916_s14, 16  ;;  %s947_s8 = scalar_lea.vmem %s916_s14, 128 }
  0x32   :  { %p627_p4 = scmp.ne.s32.totalorder %s916_s14, %s626_s0  ;;  %p631_p5 = scmp.lt.s32.totalorder %s916_s14, %s916_s14 }
  0x33   :  { %p632_p6 = scmp.lt.s32.totalorder %s947_s8, %s626_s0 }
  0x35   :  { %p633_p7 = por %p632_p6, %p631_p5 }
  0x37   :  { %p634_p8 = pnand %p633_p7, %p627_p4 }
  0x39   :  { %637 = shalt.err (!%p634_p8)  }
  0x3a   :  { %68 = dma.hbm_to_vmem [thread:$0]  %s57_s26, 16, %s916_s14, [#allocation3] }
  0x3b   :  { %s70_s11 = scalar_lea.hbm %s1066_s1, %s501_s27  ;;  %s502_s12 = sshll.u32 %s921_s2, 4 }
  0x3c   :  { %s638_s13 = scalar_lea.hbm %s70_s11, 16  ;;  %p641_p10 = scmp.lt.u32.totalorder %s70_s11, %s1066_s1 }
  0x3d   :  { %p639_p9 = scmp.ne.s32.totalorder %s70_s11, %s638_s13  ;;  %p642_p11 = scmp.lt.u32.totalorder %s938_s5, %s638_s13 }
  0x3e   :  { %p644_p13 = scmp.lt.u32.totalorder %s638_s13, %s70_s11 }
  0x3f   :  { %p643_p12 = por %p642_p11, %p641_p10 }
  0x41   :  { %p645_p0 = por %p644_p13, %p643_p12 }
  0x43   :  { %p646_p1 = pnand %p645_p0, %p639_p9 }
  0x45   :  { %649 = shalt.err (!%p646_p1)  }
  0x46   :  { %s650_s18 = scalar_lea.vmem %s923_s17, 16  ;;  %p655_p3 = scmp.lt.s32.totalorder %s923_s17, %s916_s14 }
  0x47   :  { %p651_p2 = scmp.ne.s32.totalorder %s923_s17, %s650_s18  ;;  %p656_p4 = scmp.lt.s32.totalorder %s947_s8, %s650_s18 }
  0x49   :  { %p657_p5 = por %p656_p4, %p655_p3 }
  0x4b   :  { %p658_p6 = pnand %p657_p5, %p651_p2 }
  0x4d   :  { %661 = shalt.err (!%p658_p6)  }
  0x4e   :  { %83 = dma.hbm_to_vmem [thread:$0]  %s70_s11, 16, %s923_s17, [#allocation3 + $0x1] }
  0x4f   :  { %s85_s22 = scalar_lea.hbm %s1066_s1, %s502_s12  ;;  %s503_s24 = sshll.u32 %s925_s20, 4 }
  0x50   :  { %s662_s25 = scalar_lea.hbm %s85_s22, 16  ;;  %p665_p8 = scmp.lt.u32.totalorder %s85_s22, %s1066_s1 }
  0x51   :  { %p663_p7 = scmp.ne.s32.totalorder %s85_s22, %s662_s25  ;;  %p666_p9 = scmp.lt.u32.totalorder %s938_s5, %s662_s25 }
  0x52   :  { %p668_p11 = scmp.lt.u32.totalorder %s662_s25, %s85_s22 }
  0x53   :  { %p667_p10 = por %p666_p9, %p665_p8 }
  0x55   :  { %p669_p12 = por %p668_p11, %p667_p10 }
  0x57   :  { %p670_p13 = pnand %p669_p12, %p663_p7 }
  0x59   :  { %673 = shalt.err (!%p670_p13)  }
  0x5a   :  { %s674_s17 = scalar_lea.vmem %s927_s19, 16  ;;  %p679_p1 = scmp.lt.s32.totalorder %s927_s19, %s916_s14 }
  0x5b   :  { %p675_p0 = scmp.ne.s32.totalorder %s927_s19, %s674_s17  ;;  %p680_p2 = scmp.lt.s32.totalorder %s947_s8, %s674_s17 }
  0x5d   :  { %p681_p3 = por %p680_p2, %p679_p1 }
  0x5f   :  { %p682_p4 = pnand %p681_p3, %p675_p0 }
  0x61   :  { %685 = shalt.err (!%p682_p4)  }
  0x62   :  { %98 = dma.hbm_to_vmem [thread:$0]  %s85_s22, 16, %s927_s19, [#allocation3 + $0x2] }
  0x63   :  { %s100_s29 = scalar_lea.hbm %s1066_s1, %s503_s24 }
  0x64   :  { %s686_s30 = scalar_lea.hbm %s100_s29, 16  ;;  %p689_p6 = scmp.lt.u32.totalorder %s100_s29, %s1066_s1 }
  0x65   :  { %p687_p5 = scmp.ne.s32.totalorder %s100_s29, %s686_s30  ;;  %p690_p7 = scmp.lt.u32.totalorder %s938_s5, %s686_s30 }
  0x66   :  { %p692_p9 = scmp.lt.u32.totalorder %s686_s30, %s100_s29 }
  0x67   :  { %p691_p8 = por %p690_p7, %p689_p6 }
  0x69   :  { %p693_p10 = por %p692_p9, %p691_p8 }
  0x6b   :  { %p694_p11 = pnand %p693_p10, %p687_p5 }
  0x6d   :  { %697 = shalt.err (!%p694_p11)  }
  0x6e   :  { %s698_s0 = scalar_lea.vmem %s111_s23, 16  ;;  %p703_p13 = scmp.lt.s32.totalorder %s111_s23, %s916_s14 }
  0x6f   :  { %p699_p12 = scmp.ne.s32.totalorder %s111_s23, %s698_s0  ;;  %p704_p0 = scmp.lt.s32.totalorder %s947_s8, %s698_s0 }
  0x71   :  { %p705_p1 = por %p704_p0, %p703_p13 }
  0x73   :  { %p706_p2 = pnand %p705_p1, %p699_p12 }
  0x75   :  { %709 = shalt.err (!%p706_p2)  }
  0x76   :  { %113 = dma.hbm_to_vmem [thread:$0]  %s100_s29, 16, %s111_s23, [#allocation3 + $0x3] }
  0x77   :  { %s496_s19 = sld [smem:[#allocation7 + $0x4]]  ;;  %s860_s9 = smov [#allocation2 + $0x4]  }
  0x78   :  { %s125_s10 = sshll.u32 %s860_s9, 4  ;;  %s991_s11 = sld [smem:[#allocation7 + $0x5]]  ;;  %s126_s10 = int_to_ptr.vmem [resolvable:$true] %s125_s10 }
  0x79   :  { %s861_s12 = smov [#allocation2 + $0x5]   ;;  %s993_s15 = sld [smem:[#allocation7 + $0x6]] }
  0x7a   :  { %s140_s13 = sshll.u32 %s861_s12, 4  ;;  %s862_s16 = smov [#allocation2 + $0x6]   ;;  %s995_s13 = int_to_ptr.vmem [resolvable:$true] %s140_s13 }
  0x7b   :  { %s155_s18 = sshll.u32 %s862_s16, 4  ;;  %s997_s2 = sld [smem:[#allocation7 + $0x7]]  ;;  %s999_s18 = int_to_ptr.vmem [resolvable:$true] %s155_s18 }
  0x7d   :  { %s504_s21 = sshll.u32 %s496_s19, 4 }
  0x7e   :  { %s115_s24 = scalar_lea.hbm %s1066_s1, %s504_s21  ;;  %s505_s25 = sshll.u32 %s991_s11, 4 }
  0x7f   :  { %s710_s26 = scalar_lea.hbm %s115_s24, 16  ;;  %p713_p4 = scmp.lt.u32.totalorder %s115_s24, %s1066_s1 }
  0x80   :  { %p711_p3 = scmp.ne.s32.totalorder %s115_s24, %s710_s26  ;;  %p714_p5 = scmp.lt.u32.totalorder %s938_s5, %s710_s26 }
  0x81   :  { %p716_p7 = scmp.lt.u32.totalorder %s710_s26, %s115_s24 }
  0x82   :  { %p715_p6 = por %p714_p5, %p713_p4 }
  0x84   :  { %p717_p8 = por %p716_p7, %p715_p6 }
  0x86   :  { %p718_p9 = pnand %p717_p8, %p711_p3 }
  0x88   :  { %721 = shalt.err (!%p718_p9)  }
  0x89   :  { %s722_s20 = scalar_lea.vmem %s126_s10, 16  ;;  %p727_p11 = scmp.lt.s32.totalorder %s126_s10, %s916_s14 }
  0x8a   :  { %p723_p10 = scmp.ne.s32.totalorder %s126_s10, %s722_s20  ;;  %p728_p12 = scmp.lt.s32.totalorder %s947_s8, %s722_s20 }
  0x8c   :  { %p729_p13 = por %p728_p12, %p727_p11 }
  0x8e   :  { %p730_p0 = pnand %p729_p13, %p723_p10 }
  0x90   :  { %733 = shalt.err (!%p730_p0)  }
  0x91   :  { %128 = dma.hbm_to_vmem [thread:$0]  %s115_s24, 16, %s126_s10, [#allocation3 + $0x4] }
  0x92   :  { %s130_s30 = scalar_lea.hbm %s1066_s1, %s505_s25  ;;  %s506_s6 = sshll.u32 %s993_s15, 4 }
  0x93   :  { %s734_s7 = scalar_lea.hbm %s130_s30, 16  ;;  %p737_p2 = scmp.lt.u32.totalorder %s130_s30, %s1066_s1 }
  0x94   :  { %p735_p1 = scmp.ne.s32.totalorder %s130_s30, %s734_s7  ;;  %p738_p3 = scmp.lt.u32.totalorder %s938_s5, %s734_s7 }
  0x95   :  { %p740_p5 = scmp.lt.u32.totalorder %s734_s7, %s130_s30 }
  0x96   :  { %p739_p4 = por %p738_p3, %p737_p2 }
  0x98   :  { %p741_p6 = por %p740_p5, %p739_p4 }
  0x9a   :  { %p742_p7 = pnand %p741_p6, %p735_p1 }
  0x9c   :  { %745 = shalt.err (!%p742_p7)  }
  0x9d   :  { %s746_s9 = scalar_lea.vmem %s995_s13, 16  ;;  %p751_p9 = scmp.lt.s32.totalorder %s995_s13, %s916_s14 }
  0x9e   :  { %p747_p8 = scmp.ne.s32.totalorder %s995_s13, %s746_s9  ;;  %p752_p10 = scmp.lt.s32.totalorder %s947_s8, %s746_s9 }
  0xa0   :  { %p753_p11 = por %p752_p10, %p751_p9 }
  0xa2   :  { %p754_p12 = pnand %p753_p11, %p747_p8 }
  0xa4   :  { %757 = shalt.err (!%p754_p12)  }
  0xa5   :  { %143 = dma.hbm_to_vmem [thread:$0]  %s130_s30, 16, %s995_s13, [#allocation3 + $0x5] }
  0xa6   :  { %s145_s12 = scalar_lea.hbm %s1066_s1, %s506_s6  ;;  %s507_s15 = sshll.u32 %s997_s2, 4 }
  0xa7   :  { %s758_s16 = scalar_lea.hbm %s145_s12, 16  ;;  %p761_p0 = scmp.lt.u32.totalorder %s145_s12, %s1066_s1 }
  0xa8   :  { %p759_p13 = scmp.ne.s32.totalorder %s145_s12, %s758_s16  ;;  %p762_p1 = scmp.lt.u32.totalorder %s938_s5, %s758_s16 }
  0xa9   :  { %p764_p3 = scmp.lt.u32.totalorder %s758_s16, %s145_s12 }
  0xaa   :  { %p763_p2 = por %p762_p1, %p761_p0 }
  0xac   :  { %p765_p4 = por %p764_p3, %p763_p2 }
  0xae   :  { %p766_p5 = pnand %p765_p4, %p759_p13 }
  0xb0   :  { %769 = shalt.err (!%p766_p5)  }
  0xb1   :  { %s770_s13 = scalar_lea.vmem %s999_s18, 16  ;;  %p775_p7 = scmp.lt.s32.totalorder %s999_s18, %s916_s14 }
  0xb2   :  { %p771_p6 = scmp.ne.s32.totalorder %s999_s18, %s770_s13  ;;  %p776_p8 = scmp.lt.s32.totalorder %s947_s8, %s770_s13 }
  0xb4   :  { %p777_p9 = por %p776_p8, %p775_p7 }
  0xb6   :  { %p778_p10 = pnand %p777_p9, %p771_p6 }
  0xb8   :  { %781 = shalt.err (!%p778_p10)  }
  0xb9   :  { %158 = dma.hbm_to_vmem [thread:$0]  %s145_s12, 16, %s999_s18, [#allocation3 + $0x6] }
  0xba   :  { %s160_s24 = scalar_lea.hbm %s1066_s1, %s507_s15  ;;  %s863_s25 = smov [#allocation2 + $0x7]  }
  0xbb   :  { %s170_s26 = sshll.u32 %s863_s25, 4  ;;  %s782_s27 = scalar_lea.hbm %s160_s24, 16  ;;  %s171_s26 = int_to_ptr.vmem [resolvable:$true] %s170_s26 }
  0xbc   :  { %p783_p11 = scmp.ne.s32.totalorder %s160_s24, %s782_s27  ;;  %p785_p12 = scmp.lt.u32.totalorder %s160_s24, %s1066_s1 }
  0xbd   :  { %p786_p13 = scmp.lt.u32.totalorder %s938_s5, %s782_s27  ;;  %p788_p1 = scmp.lt.u32.totalorder %s782_s27, %s160_s24 }
  0xbf   :  { %p787_p0 = por %p786_p13, %p785_p12 }
  0xc1   :  { %p789_p2 = por %p788_p1, %p787_p0 }
  0xc3   :  { %p790_p3 = pnand %p789_p2, %p783_p11 }
  0xc5   :  { %793 = shalt.err (!%p790_p3)  }
  0xc6   :  { %s794_s18 = scalar_lea.vmem %s171_s26, 16  ;;  %p799_p5 = scmp.lt.s32.totalorder %s171_s26, %s916_s14 }
  0xc7   :  { %p795_p4 = scmp.ne.s32.totalorder %s171_s26, %s794_s18  ;;  %p800_p6 = scmp.lt.s32.totalorder %s947_s8, %s794_s18 }
  0xc9   :  { %p801_p7 = por %p800_p6, %p799_p5 }
  0xcb   :  { %p802_p8 = pnand %p801_p7, %p795_p4 }
  0xcd   :  { %805 = shalt.err (!%p802_p8)  }
  0xce   :  { %173 = dma.hbm_to_vmem [thread:$0]  %s160_s24, 16, %s171_s26, [#allocation3 + $0x7] }
  0xcf   :  { %832 = dma.done.wait [#allocation3], 16 }
  0xd0   :  { %833 = vsyncadd [#allocation3], 4294967280 }
  0xd1   :  { %834 = dma.done.wait [#allocation3 + $0x1], 16 }
  0xd2   :  { %835 = vsyncadd [#allocation3 + $0x1], 4294967280 }
  0xd3   :  { %836 = dma.done.wait [#allocation3 + $0x2], 16 }
  0xd4   :  { %837 = vsyncadd [#allocation3 + $0x2], 4294967280 }
  0xd5   :  { %838 = dma.done.wait [#allocation3 + $0x3], 16 }
  0xd6   :  { %839 = vsyncadd [#allocation3 + $0x3], 4294967280 }
  0xd7   :  { %840 = dma.done.wait [#allocation3 + $0x4], 16 }
  0xd8   :  { %841 = vsyncadd [#allocation3 + $0x4], 4294967280 }
  0xd9   :  { %842 = dma.done.wait [#allocation3 + $0x5], 16 }
  0xda   :  { %843 = vsyncadd [#allocation3 + $0x5], 4294967280 }
  0xdb   :  { %844 = dma.done.wait [#allocation3 + $0x6], 16 }
  0xdc   :  { %845 = vsyncadd [#allocation3 + $0x6], 4294967280 }
  0xdd   :  { %846 = dma.done.wait [#allocation3 + $0x7], 16 }
  0xde   :  { %847 = vsyncadd [#allocation3 + $0x7], 4294967280  ;;  %v864_v2 = vmov 0   ;;  %v550_v3 = vld [vmem:[#allocation8 + $0x4] ss:$8 sps:$4 sm:$0xff]   ;;  %v210_v21 = vlaneseq  ;;  %v352_v38 = vld [vmem:[#allocation4] sm:$0xff] }
  0xdf   :  { %332 = vmatprep.mubr.bf16.mxu0 %v864_v2  ;;  %548 = vset.pattern.permute.xlu0 %v864_v2  ;;  %v552_v4 = vld [vmem:[#allocation8] ss:$8 sps:$4 sm:$0xff]   ;;  %v553_v5 = vld [vmem:[#allocation8 + $0x14] ss:$8 sps:$4 sm:$0xff]   ;;  %v555_v6 = vld [vmem:[#allocation8 + $0x10] ss:$8 sps:$4 sm:$0xff]  }
  0xe0   :  { %549 = vset.pattern.permute.xlu1 %v864_v2  ;;  %300 = vmatprep.subr.bf16.mxu0 %v550_v3  ;;  %v556_v7 = vld [vmem:[#allocation8 + $0x24] ss:$8 sps:$4 sm:$0xff]   ;;  %v558_v8 = vld [vmem:[#allocation8 + $0x20] ss:$8 sps:$4 sm:$0xff]   ;;  %v559_v9 = vld [vmem:[#allocation8 + $0x34] ss:$8 sps:$4 sm:$0xff]  }
  0xe1   :  { %301 = vmatpush1.bf16.msra.mxu0 %v552_v4  ;;  %v561_v10 = vld [vmem:[#allocation8 + $0x30] ss:$8 sps:$4 sm:$0xff]   ;;  %v562_v11 = vld [vmem:[#allocation8 + $0x44] ss:$8 sps:$4 sm:$0xff]   ;;  %v564_v12 = vld [vmem:[#allocation8 + $0x40] ss:$8 sps:$4 sm:$0xff]  }
  0xe2   :  { %302 = vmatprep.subr.bf16.mxu0 %v553_v5  ;;  %v565_v13 = vld [vmem:[#allocation8 + $0x54] ss:$8 sps:$4 sm:$0xff]   ;;  %v567_v14 = vld [vmem:[#allocation8 + $0x50] ss:$8 sps:$4 sm:$0xff]   ;;  %v568_v15 = vld [vmem:[#allocation8 + $0x64] ss:$8 sps:$4 sm:$0xff]  }
  0xe3   :  { %v570_v16 = vld [vmem:[#allocation8 + $0x60] ss:$8 sps:$4 sm:$0xff]   ;;  %v571_v17 = vld [vmem:[#allocation8 + $0x74] ss:$8 sps:$4 sm:$0xff]   ;;  %v573_v18 = vld [vmem:[#allocation8 + $0x70] ss:$8 sps:$4 sm:$0xff]  }
  0xe4   :  { %v190_v19 = vld [vmem:[#allocation2] sm:$0xff]  ;;  %v211_v22 = vshrl.u32 %v210_v21, 7  ;;  %v342_v23 = vand.u32 127, %v210_v21  ;;  %v208_v25 = vld [vmem:[%s1068_s3] sm:$0x3]  ;;  %v357_v52 = vld [vmem:[#allocation5] sm:$0xff] }
  0xe5   :  { %303 = vmatpush1.bf16.msra.mxu0 %v555_v6  ;;  %v191_v20 = vpack.c.bf16 %v190_v19, %v190_v19  ;;  %s865_s3 = smov [#allocation11]  }
  0xe6   :  { %304 = vmatprep.subr.bf16.mxu0 %v556_v7  ;;  %v216_v24 = vsub.s32 1, %v211_v22  ;;  %v212_v26 = vsub.s32 0, %v211_v22  ;;  %v343_v27 = vadd.s32 128, %v342_v23  ;;  %s411_s5 = sshll.u32 %s865_s3, 4  ;;  %s412_s5 = int_to_ptr.vmem [resolvable:$true] %s411_s5 }
  0xe7   :  { %s806_s8 = scalar_lea.vmem %s412_s5, 256  ;;  %p811_p10 = scmp.lt.s32.totalorder %s412_s5, %s412_s5 }
  0xe8   :  { %v217_v28 = vrot.slane %v208_v25, %v216_v24  ;;  %v213_v29 = vrot.slane %v208_v25, %v212_v26  ;;  %vm349_vm1 = vcmp.lt.s32.totalorder %v343_v27, 200  ;;  %p807_p9 = scmp.ne.s32.totalorder %s412_s5, %s806_s8  ;;  %p812_p11 = scmp.lt.s32.totalorder %s806_s8, %s806_s8 }
  0xe9   :  { %305 = vmatpush1.bf16.msra.mxu0 %v558_v8 }
  0xea   :  { %306 = vmatprep.subr.bf16.mxu0 %v559_v9  ;;  %p813_p12 = por %p812_p11, %p811_p10 }
  0xec   :  { %p814_p13 = pnand %p813_p12, %p807_p9 }
  0xed   :  { %307 = vmatpush1.bf16.msra.mxu0 %v561_v10 }
  0xee   :  { %308 = vmatprep.subr.bf16.mxu0 %v562_v11 }
  0xf1   :  { %309 = vmatpush1.bf16.msra.mxu0 %v564_v12 }
  0xf2   :  { %310 = vmatprep.subr.bf16.mxu0 %v565_v13 }
  0xf5   :  { %311 = vmatpush1.bf16.msra.mxu0 %v567_v14 }
  0xf6   :  { %312 = vmatprep.subr.bf16.mxu0 %v568_v15 }
  0xf9   :  { %313 = vmatpush1.bf16.msra.mxu0 %v570_v16 }
  0xfa   :  { %314 = vmatprep.subr.bf16.mxu0 %v571_v17 }
  0xfd   :  { %315 = vmatpush1.bf16.msra.mxu0 %v573_v18 }
 0x100   :  { %333 = vmatmul.mubr.bf16.vlgmr.msra.gmra.mrb[0].mxu0 %v191_v20 }
 0x1d3   :  { %v334_v30 = vpop.f32.mrb[0].mxu0 }
 0x1d4   :  { %v336_v31 = vpop.f32.mrb[1].mxu0  ;;  %v335_v34 = vadd.f32 %v334_v30, %v213_v29 }
 0x1d5   :  { %v337_v32 = vadd.f32 %v336_v31, %v217_v28  ;;  %v338_v33 = vpop.f32.mrb[2].mxu0 }
 0x1d6   :  { %v339_v35 = vpop.f32.mrb[3].mxu0 }
 0x1d7   :  { %v351_v36 = vsel %vm349_vm1, %v337_v32, -1e+30 }
 0x1d8   :  { %v353_v37 = vmax.f32 %v335_v34, %v351_v36 }
 0x1da   :  { %354 = vmax.xlane.f32.xlu0 %v353_v37 }
 0x267   :  { %v355_v39 = vpop.xlane.xlu0 %354 }
 0x268   :  { %v356_v40 = vmax.f32 %v352_v38, %v355_v39 }
 0x26a   :  { %v358_v41 = vsub.f32 %v352_v38, %v356_v40  ;;  %379 = vst.msk [vmem:[#allocation4] sm:$0xff] %vm37_vm0, %v356_v40  ;;  %364 = vperm.xlu0 %548, %v356_v40  }
 0x26c   :  { %v359_v50 = vmul.f32 1.442695, %v358_v41 }
 0x271   :  { %v389_v59 = vld [vmem:[#allocation4] sm:$0xff] }
 0x2e9   :  { %v365_v42 = vpop.permute.xlu0 %364 }
 0x2ea   :  { %v367_v43 = vsub.f32 %v335_v34, %v365_v42  ;;  %v368_v44 = vsub.f32 %v351_v36, %v365_v42 }
 0x2ec   :  { %v369_v45 = vmul.f32 1.442695, %v367_v43  ;;  %v371_v46 = vmul.f32 1.442695, %v368_v44 }
 0x2ee   :  { %574 = vpow2.f32 %v369_v45 }
 0x2ef   :  { %576 = vpow2.f32 %v371_v46 }
 0x2f0   :  { %578 = vpow2.f32 %v359_v50 }
 0x2f8   :  { %v575_v47 = vpop.eup %574 }
 0x2f9   :  { %v577_v48 = vpop.eup %576 }
 0x2fa   :  { %v373_v49 = vadd.f32 %v577_v48, %v575_v47  ;;  %v579_v51 = vpop.eup %578 }
 0x2fb   :  { %v361_v53 = vmul.f32 %v579_v51, %v357_v52 }
 0x2fc   :  { %374 = vadd.xlane.f32.xlu1 %v373_v49 }
 0x389   :  { %v375_v54 = vpop.xlane.xlu1 %374 }
 0x38a   :  { %v376_v55 = vadd.f32 %v375_v54, %v361_v53 }
 0x38c   :  { %378 = vst.msk [vmem:[#allocation5] sm:$0xff] %vm37_vm0, %v376_v55 }
 0x393   :  { %v390_v56 = vld [vmem:[#allocation5] sm:$0xff] }
 0x394   :  { %580 = vlog2.f32 %v390_v56 }
 0x39e   :  { %v581_v57 = vpop.eup %580 }
 0x39f   :  { %v392_v58 = vmul.f32 0.6931472, %v581_v57 }
 0x3a1   :  { %v393_v60 = vadd.f32 %v392_v58, %v389_v59 }
 0x3a3   :  { %398 = vperm.xlu1 %549, %v393_v60  }
 0x422   :  { %v399_v61 = vpop.permute.xlu1 %398 }
 0x423   :  { %v401_v62 = vsub.f32 %v335_v34, %v399_v61  ;;  %v402_v63 = vsub.f32 %v337_v32, %v399_v61 }
 0x425   :  { %403 = vst [vmem:[#allocation11] sm:$0xff] %v401_v62  ;;  %404 = vst [vmem:[#allocation11 + $0x8] sm:$0xff] %v402_v63 }
 0x426   :  { %817 = shalt.err (!%p814_p13)
}
 0x427   :  { %s818_s30 = scalar_lea.hbm %s1069_s4, 256 }
 0x428   :  { %p819_p0 = scmp.ne.s32.totalorder %s1069_s4, %s818_s30  ;;  %p822_p1 = scmp.lt.u32.totalorder %s818_s30, %s1069_s4 }
 0x42a   :  { %p824_p2 = pnand %p822_p1, %p819_p0 }
 0x42c   :  { %827 = shalt.err (!%p824_p2)
}
 0x42d   :  { %414 = dma.vmem_to_hbm [thread:$0]  %s412_s5, 256, %s1069_s4, [#allocation10]  }
 0x42e   :  { %848 = dma.done.wait [#allocation10], 256  }
 0x42f   :  { %849 = vsyncadd [#allocation10], 4294967040 }
 0x430   :  { %418 = vsyncpa [#allocation9], 1 }
 0x431   :  { %419 = vsyncpa [#allocation10], 1 }
 0x432   :  { %420 = vsyncmov [#allocation3] }
 0x435   :  { %s421_s11 = vpop.sfrf %420 }
 0x436   :  { %p524_p3 = scmp.ne.s32.totalorder %s421_s11, 0 }
 0x438   :  { %425 = shalt.err (%p524_p3)  }
 0x439   :  { %427 = vsyncmov [#allocation3 + $0x1] }
 0x43c   :  { %s428_s12 = vpop.sfrf %427 }
 0x43d   :  { %p525_p4 = scmp.ne.s32.totalorder %s428_s12, 0 }
 0x43f   :  { %432 = shalt.err (%p525_p4)  }
 0x440   :  { %434 = vsyncmov [#allocation3 + $0x2] }
 0x443   :  { %s435_s15 = vpop.sfrf %434 }
 0x444   :  { %p526_p5 = scmp.ne.s32.totalorder %s435_s15, 0 }
 0x446   :  { %439 = shalt.err (%p526_p5)  }
 0x447   :  { %441 = vsyncmov [#allocation3 + $0x3] }
 0x44a   :  { %s442_s16 = vpop.sfrf %441 }
 0x44b   :  { %p527_p6 = scmp.ne.s32.totalorder %s442_s16, 0 }
 0x44d   :  { %446 = shalt.err (%p527_p6)  }
 0x44e   :  { %448 = vsyncmov [#allocation3 + $0x4] }
 0x451   :  { %s449_s4 = vpop.sfrf %448 }
 0x452   :  { %p528_p7 = scmp.ne.s32.totalorder %s449_s4, 0 }
 0x454   :  { %453 = shalt.err (%p528_p7)  }
 0x455   :  { %455 = vsyncmov [#allocation3 + $0x5] }
 0x458   :  { %s456_s21 = vpop.sfrf %455 }
 0x459   :  { %p529_p8 = scmp.ne.s32.totalorder %s456_s21, 0 }
 0x45b   :  { %460 = shalt.err (%p529_p8)  }
 0x45c   :  { %462 = vsyncmov [#allocation3 + $0x6] }
 0x45f   :  { %s463_s23 = vpop.sfrf %462 }
 0x460   :  { %p530_p9 = scmp.ne.s32.totalorder %s463_s23, 0 }
 0x462   :  { %467 = shalt.err (%p530_p9)  }
 0x463   :  { %469 = vsyncmov [#allocation3 + $0x7] }
 0x466   :  { %s470_s13 = vpop.sfrf %469 }
 0x467   :  { %p531_p10 = scmp.ne.s32.totalorder %s470_s13, 0 }
 0x469   :  { %474 = shalt.err (%p531_p10)  }

</bundles_post_ra>
